<compile_context>
chip_gen: v5e
topology: v5e:2x2
jax: 0.10.0
libtpu: 0.0.40
codegen_flags: <defaults>
</compile_context>

<pallas_src>
import functools

import jax
import jax.numpy as jnp
import numpy as np
from jax.experimental import pallas as pl
from jax.experimental.pallas import tpu as pltpu


def _round_up(x, m):
    return ((x + m - 1) // m) * m


def fwdkl_kernel(x_ref, mask_ref, params_ref, out_ref, *, D, K):
    """One row-tile of samples.

    x_ref:      (D, TR, 128) VMEM  -- lane-dense per-dimension slabs
    mask_ref:   (TR, 128)    VMEM  -- 1.0 for valid samples, 0.0 for padding
    params_ref: (K+1, P)     SMEM  -- row 0 = q, rows 1..K = mixture components
                row layout: [mean(D), quad-form coefs upper-tri (off-diag
                             pre-doubled), log-det const, weight]
    out_ref:    (1, 8, 128)  VMEM  -- lane-dense partial sum for this tile
    """
    n_coef = D * (D + 1) // 2
    const_idx = D + n_coef
    w_idx = const_idx + 1

    xs = [x_ref[j] for j in range(D)]          # D x (TR, 128) dense f32 vregs

    def log_normal(g):
        z = [xs[j] - params_ref[g, j] for j in range(D)]
        quad = None
        c = 0
        for i in range(D):
            for j in range(i, D):
                term = params_ref[g, D + c] * (z[i] * z[j])
                quad = term if quad is None else quad + term
                c += 1
        return -0.5 * quad + params_ref[g, const_idx]

    log_q = log_normal(0)

    # log p(X) via max-shifted log-sum-exp over the mixture components.
    log_n = [log_normal(k + 1) for k in range(K)]
    m = log_n[0]
    for k in range(1, K):
        m = jnp.maximum(m, log_n[k])
    acc = jnp.zeros_like(m)
    for k in range(K):
        acc = acc + params_ref[k + 1, w_idx] * jnp.exp(log_n[k] - m)
    log_p = m + jnp.log(acc)

    contrib = jnp.exp(log_q) * (log_q - log_p) * mask_ref[...]
    tr = contrib.shape[0]
    partial = contrib.reshape(tr // 8, 8, 128).sum(axis=0)   # (8, 128)
    out_ref[0] = partial


def fwdkl_forward(X, mean_q, cov_q, comp_means, comp_covs, comp_weights,
                  *, max_tile_rows=512):
    """X: (N, d) float32. Returns the scalar forward-KL estimate (sum)."""
    X = jnp.asarray(X, jnp.float32)
    N, D = X.shape
    K = comp_means.shape[0]

    log2pi = jnp.log(jnp.asarray(2.0 * np.pi, jnp.float32))

    # ---- glue: pack all Gaussian scalars into one small SMEM table ----
    means = jnp.concatenate(
        [jnp.reshape(mean_q, (1, D)), jnp.reshape(comp_means, (K, D))], axis=0)
    covs = jnp.concatenate(
        [jnp.reshape(cov_q, (1, D, D)), jnp.reshape(comp_covs, (K, D, D))], axis=0)
    weights = jnp.concatenate(
        [jnp.ones((1,), jnp.float32),
         jnp.reshape(comp_weights, (K,)).astype(jnp.float32)], axis=0)

    rows = []
    for g in range(K + 1):
        invC = jnp.linalg.inv(covs[g]).astype(jnp.float32)
        coefs = []
        for i in range(D):
            for j in range(i, D):
                coefs.append(invC[i, j] if i == j else invC[i, j] + invC[j, i])
        const = -0.5 * jnp.log(jnp.linalg.det(covs[g])) - 0.5 * D * log2pi
        rows.append(jnp.concatenate([
            jnp.reshape(means[g], (D,)).astype(jnp.float32),
            jnp.stack(coefs).astype(jnp.float32),
            jnp.reshape(const, (1,)).astype(jnp.float32),
            jnp.reshape(weights[g], (1,)).astype(jnp.float32),
        ]))
    params = jnp.stack(rows)                                   # (K+1, P) f32

    # ---- lane-dense sample layout: (D, R, 128), padded + masked ----
    rows_needed = max(1, -(-N // 128))
    tile_rows = min(max_tile_rows, _round_up(rows_needed, 8))
    R = _round_up(rows_needed, tile_rows)
    num_tiles = R // tile_rows
    total = R * 128

    Xp = jnp.pad(X, ((0, total - N), (0, 0)))                  # (total, D)
    x_slabs = jnp.transpose(Xp, (1, 0)).reshape(D, R, 128)     # (D, R, 128)
    mask = (jnp.arange(total, dtype=jnp.int32) < N).astype(jnp.float32)
    mask = mask.reshape(R, 128)

    kernel = functools.partial(fwdkl_kernel, D=D, K=K)
    partials = pl.pallas_call(
        kernel,
        out_shape=jax.ShapeDtypeStruct((num_tiles, 8, 128), jnp.float32),
        grid_spec=pltpu.PrefetchScalarGridSpec(
            num_scalar_prefetch=0,
            grid=(num_tiles,),
            in_specs=[
                pl.BlockSpec((D, tile_rows, 128), lambda t: (0, t, 0)),  # X slabs
                pl.BlockSpec((tile_rows, 128), lambda t: (t, 0)),        # mask
                pl.BlockSpec(memory_space=pltpu.MemorySpace.SMEM),       # params
            ],
            out_specs=pl.BlockSpec((1, 8, 128), lambda t: (t, 0, 0)),
        ),
        compiler_params=pltpu.CompilerParams(
            dimension_semantics=("parallel",)),   # independent tiles: dual TC on v7x
    )(x_slabs, mask, params)

    return jnp.sum(partials)


def fwdkl_reference(X, mean_q, cov_q, comp_means, comp_covs, comp_weights):
    """Pure-JAX mirror of the PyTorch forward for verification."""
    D = X.shape[1]
    log2pi = jnp.log(jnp.asarray(2.0 * np.pi, jnp.float32))

    def log_normal(X, m, C):
        Z = X - m[None, :]
        invC = jnp.linalg.inv(C)
        quad = jnp.sum(Z * (Z @ invC.T), axis=1, keepdims=True)
        return -0.5 * quad - 0.5 * jnp.log(jnp.linalg.det(C)) - 0.5 * D * log2pi

    lq = log_normal(X, mean_q, cov_q)
    p = jnp.zeros_like(lq)
    for k in range(comp_means.shape[0]):
        p = p + comp_weights[k] * jnp.exp(log_normal(X, comp_means[k], comp_covs[k]))
    lp = jnp.log(p)
    return jnp.sum(jnp.exp(lq) * (lq - lp))


if __name__ == "__main__":
    N, D = 200, 2          # sample_size=200, dimensions=2 (module defaults)

    # Deterministic parameter init, mirroring BaseDivergence.__init__:
    mean_q = jnp.ones((D,), jnp.float32)          # torch.ones((dimensions, 1))
    cov_q = jnp.eye(D, dtype=jnp.float32)         # torch.eye(dimensions)

    # dist_params = [(mean, covariance, weight), ...] — fixed in-script.
    comp_means = jnp.array([[-1.0, -1.0],
                            [2.0, 1.0]], jnp.float32)
    comp_covs = jnp.stack([
        jnp.array([[0.5, 0.0], [0.0, 0.5]], jnp.float32),
        jnp.array([[1.0, 0.2], [0.2, 1.0]], jnp.float32),
    ])
    comp_weights = jnp.array([0.4, 0.6], jnp.float32)

    # X as PyTorch would see it: (N, d, 1); squeeze for the (N, d) kernel layout.
    key = jax.random.PRNGKey(0)
    X_torch_layout = jax.random.normal(key, (N, D, 1), jnp.float32)
    X = X_torch_layout[..., 0]

    out = fwdkl_forward(X, mean_q, cov_q, comp_means, comp_covs, comp_weights)
    out = jax.block_until_ready(out)

    ref = jax.block_until_ready(
        fwdkl_reference(X, mean_q, cov_q, comp_means, comp_covs, comp_weights))
    np.testing.assert_allclose(np.asarray(out), np.asarray(ref),
                               rtol=1e-4, atol=1e-5)

    print("KERNEL_OK")
</pallas_src>

<mosaic_0001>
module attributes {stable_mosaic.version = 11 : i64} {
  func.func @fwdkl_kernel(%arg0: i32, %arg1: memref<2x8x128xf32, #tpu.memory_space<vmem>>, %arg2: memref<8x128xf32, #tpu.memory_space<vmem>>, %arg3: memref<3x7xf32, #tpu.memory_space<smem>>, %arg4: memref<1x8x128xf32, #tpu.memory_space<vmem>>) attributes {dimension_semantics = [#tpu.dimension_semantics<parallel>], iteration_bounds = array<i64: 1>, scalar_prefetch = 0 : i64, scratch_operands = 0 : i64, tpu.core_type = #tpu.core_type<tc>, window_params = [{transform_indices = @transform_0, window_bounds = array<i64: 2, 8, 128>}, {transform_indices = @transform_1, window_bounds = array<i64: 8, 128>}, {transform_indices = @transform_2, window_bounds = array<i64: 3, 7>}, {transform_indices = @transform_3, window_bounds = array<i64: 1, 8, 128>}]} {
    %c0 = arith.constant 0 : index
    %c0_0 = arith.constant 0 : index
    %c0_1 = arith.constant 0 : index
    %0 = vector.load %arg1[%c0, %c0_0, %c0_1] : memref<2x8x128xf32, #tpu.memory_space<vmem>>, vector<1x8x128xf32>
    %1 = vector.shape_cast %0 : vector<1x8x128xf32> to vector<8x128xf32>
    %c1 = arith.constant 1 : index
    %c0_2 = arith.constant 0 : index
    %c0_3 = arith.constant 0 : index
    %2 = vector.load %arg1[%c1, %c0_2, %c0_3] : memref<2x8x128xf32, #tpu.memory_space<vmem>>, vector<1x8x128xf32>
    %3 = vector.shape_cast %2 : vector<1x8x128xf32> to vector<8x128xf32>
    %c0_4 = arith.constant 0 : index
    %c0_5 = arith.constant 0 : index
    %4 = memref.load %arg3[%c0_4, %c0_5] : memref<3x7xf32, #tpu.memory_space<smem>>
    %5 = vector.broadcast %4 : f32 to vector<8x128xf32>
    %6 = arith.subf %1, %5 : vector<8x128xf32>
    %c0_6 = arith.constant 0 : index
    %c1_7 = arith.constant 1 : index
    %7 = memref.load %arg3[%c0_6, %c1_7] : memref<3x7xf32, #tpu.memory_space<smem>>
    %8 = vector.broadcast %7 : f32 to vector<8x128xf32>
    %9 = arith.subf %3, %8 : vector<8x128xf32>
    %c0_8 = arith.constant 0 : index
    %c2 = arith.constant 2 : index
    %10 = memref.load %arg3[%c0_8, %c2] : memref<3x7xf32, #tpu.memory_space<smem>>
    %11 = arith.mulf %6, %6 : vector<8x128xf32>
    %12 = vector.broadcast %10 : f32 to vector<8x128xf32>
    %13 = arith.mulf %12, %11 : vector<8x128xf32>
    %c0_9 = arith.constant 0 : index
    %c3 = arith.constant 3 : index
    %14 = memref.load %arg3[%c0_9, %c3] : memref<3x7xf32, #tpu.memory_space<smem>>
    %15 = arith.mulf %6, %9 : vector<8x128xf32>
    %16 = vector.broadcast %14 : f32 to vector<8x128xf32>
    %17 = arith.mulf %16, %15 : vector<8x128xf32>
    %18 = arith.addf %13, %17 : vector<8x128xf32>
    %c0_10 = arith.constant 0 : index
    %c4 = arith.constant 4 : index
    %19 = memref.load %arg3[%c0_10, %c4] : memref<3x7xf32, #tpu.memory_space<smem>>
    %20 = arith.mulf %9, %9 : vector<8x128xf32>
    %21 = vector.broadcast %19 : f32 to vector<8x128xf32>
    %22 = arith.mulf %21, %20 : vector<8x128xf32>
    %23 = arith.addf %18, %22 : vector<8x128xf32>
    %cst = arith.constant -5.000000e-01 : f32
    %24 = vector.broadcast %cst : f32 to vector<8x128xf32>
    %25 = arith.mulf %24, %23 : vector<8x128xf32>
    %c0_11 = arith.constant 0 : index
    %c5 = arith.constant 5 : index
    %26 = memref.load %arg3[%c0_11, %c5] : memref<3x7xf32, #tpu.memory_space<smem>>
    %27 = vector.broadcast %26 : f32 to vector<8x128xf32>
    %28 = arith.addf %25, %27 : vector<8x128xf32>
    %c1_12 = arith.constant 1 : index
    %c0_13 = arith.constant 0 : index
    %29 = memref.load %arg3[%c1_12, %c0_13] : memref<3x7xf32, #tpu.memory_space<smem>>
    %30 = vector.broadcast %29 : f32 to vector<8x128xf32>
    %31 = arith.subf %1, %30 : vector<8x128xf32>
    %c1_14 = arith.constant 1 : index
    %c1_15 = arith.constant 1 : index
    %32 = memref.load %arg3[%c1_14, %c1_15] : memref<3x7xf32, #tpu.memory_space<smem>>
    %33 = vector.broadcast %32 : f32 to vector<8x128xf32>
    %34 = arith.subf %3, %33 : vector<8x128xf32>
    %c1_16 = arith.constant 1 : index
    %c2_17 = arith.constant 2 : index
    %35 = memref.load %arg3[%c1_16, %c2_17] : memref<3x7xf32, #tpu.memory_space<smem>>
    %36 = arith.mulf %31, %31 : vector<8x128xf32>
    %37 = vector.broadcast %35 : f32 to vector<8x128xf32>
    %38 = arith.mulf %37, %36 : vector<8x128xf32>
    %c1_18 = arith.constant 1 : index
    %c3_19 = arith.constant 3 : index
    %39 = memref.load %arg3[%c1_18, %c3_19] : memref<3x7xf32, #tpu.memory_space<smem>>
    %40 = arith.mulf %31, %34 : vector<8x128xf32>
    %41 = vector.broadcast %39 : f32 to vector<8x128xf32>
    %42 = arith.mulf %41, %40 : vector<8x128xf32>
    %43 = arith.addf %38, %42 : vector<8x128xf32>
    %c1_20 = arith.constant 1 : index
    %c4_21 = arith.constant 4 : index
    %44 = memref.load %arg3[%c1_20, %c4_21] : memref<3x7xf32, #tpu.memory_space<smem>>
    %45 = arith.mulf %34, %34 : vector<8x128xf32>
    %46 = vector.broadcast %44 : f32 to vector<8x128xf32>
    %47 = arith.mulf %46, %45 : vector<8x128xf32>
    %48 = arith.addf %43, %47 : vector<8x128xf32>
    %cst_22 = arith.constant -5.000000e-01 : f32
    %49 = vector.broadcast %cst_22 : f32 to vector<8x128xf32>
    %50 = arith.mulf %49, %48 : vector<8x128xf32>
    %c1_23 = arith.constant 1 : index
    %c5_24 = arith.constant 5 : index
    %51 = memref.load %arg3[%c1_23, %c5_24] : memref<3x7xf32, #tpu.memory_space<smem>>
    %52 = vector.broadcast %51 : f32 to vector<8x128xf32>
    %53 = arith.addf %50, %52 : vector<8x128xf32>
    %c2_25 = arith.constant 2 : index
    %c0_26 = arith.constant 0 : index
    %54 = memref.load %arg3[%c2_25, %c0_26] : memref<3x7xf32, #tpu.memory_space<smem>>
    %55 = vector.broadcast %54 : f32 to vector<8x128xf32>
    %56 = arith.subf %1, %55 : vector<8x128xf32>
    %c2_27 = arith.constant 2 : index
    %c1_28 = arith.constant 1 : index
    %57 = memref.load %arg3[%c2_27, %c1_28] : memref<3x7xf32, #tpu.memory_space<smem>>
    %58 = vector.broadcast %57 : f32 to vector<8x128xf32>
    %59 = arith.subf %3, %58 : vector<8x128xf32>
    %c2_29 = arith.constant 2 : index
    %c2_30 = arith.constant 2 : index
    %60 = memref.load %arg3[%c2_29, %c2_30] : memref<3x7xf32, #tpu.memory_space<smem>>
    %61 = arith.mulf %56, %56 : vector<8x128xf32>
    %62 = vector.broadcast %60 : f32 to vector<8x128xf32>
    %63 = arith.mulf %62, %61 : vector<8x128xf32>
    %c2_31 = arith.constant 2 : index
    %c3_32 = arith.constant 3 : index
    %64 = memref.load %arg3[%c2_31, %c3_32] : memref<3x7xf32, #tpu.memory_space<smem>>
    %65 = arith.mulf %56, %59 : vector<8x128xf32>
    %66 = vector.broadcast %64 : f32 to vector<8x128xf32>
    %67 = arith.mulf %66, %65 : vector<8x128xf32>
    %68 = arith.addf %63, %67 : vector<8x128xf32>
    %c2_33 = arith.constant 2 : index
    %c4_34 = arith.constant 4 : index
    %69 = memref.load %arg3[%c2_33, %c4_34] : memref<3x7xf32, #tpu.memory_space<smem>>
    %70 = arith.mulf %59, %59 : vector<8x128xf32>
    %71 = vector.broadcast %69 : f32 to vector<8x128xf32>
    %72 = arith.mulf %71, %70 : vector<8x128xf32>
    %73 = arith.addf %68, %72 : vector<8x128xf32>
    %cst_35 = arith.constant -5.000000e-01 : f32
    %74 = vector.broadcast %cst_35 : f32 to vector<8x128xf32>
    %75 = arith.mulf %74, %73 : vector<8x128xf32>
    %c2_36 = arith.constant 2 : index
    %c5_37 = arith.constant 5 : index
    %76 = memref.load %arg3[%c2_36, %c5_37] : memref<3x7xf32, #tpu.memory_space<smem>>
    %77 = vector.broadcast %76 : f32 to vector<8x128xf32>
    %78 = arith.addf %75, %77 : vector<8x128xf32>
    %79 = arith.maximumf %53, %78 : vector<8x128xf32>
    %cst_38 = arith.constant 0.000000e+00 : f32
    %80 = vector.broadcast %cst_38 : f32 to vector<8x128xf32>
    %c1_39 = arith.constant 1 : index
    %c6 = arith.constant 6 : index
    %81 = memref.load %arg3[%c1_39, %c6] : memref<3x7xf32, #tpu.memory_space<smem>>
    %82 = arith.subf %53, %79 : vector<8x128xf32>
    %83 = math.exp %82 : vector<8x128xf32>
    %84 = vector.broadcast %81 : f32 to vector<8x128xf32>
    %85 = arith.mulf %84, %83 : vector<8x128xf32>
    %86 = arith.addf %80, %85 : vector<8x128xf32>
    %c2_40 = arith.constant 2 : index
    %c6_41 = arith.constant 6 : index
    %87 = memref.load %arg3[%c2_40, %c6_41] : memref<3x7xf32, #tpu.memory_space<smem>>
    %88 = arith.subf %78, %79 : vector<8x128xf32>
    %89 = math.exp %88 : vector<8x128xf32>
    %90 = vector.broadcast %87 : f32 to vector<8x128xf32>
    %91 = arith.mulf %90, %89 : vector<8x128xf32>
    %92 = arith.addf %86, %91 : vector<8x128xf32>
    %93 = math.log %92 : vector<8x128xf32>
    %94 = arith.addf %79, %93 : vector<8x128xf32>
    %95 = math.exp %28 : vector<8x128xf32>
    %96 = arith.subf %28, %94 : vector<8x128xf32>
    %97 = arith.mulf %95, %96 : vector<8x128xf32>
    %c0_42 = arith.constant 0 : index
    %c0_43 = arith.constant 0 : index
    %98 = vector.load %arg2[%c0_42, %c0_43] : memref<8x128xf32, #tpu.memory_space<vmem>>, vector<8x128xf32>
    %99 = arith.mulf %97, %98 : vector<8x128xf32>
    %100 = vector.shape_cast %99 : vector<8x128xf32> to vector<1x8x128xf32>
    %cst_44 = arith.constant dense<0.000000e+00> : vector<8x128xf32>
    %101 = vector.multi_reduction <add>, %100, %cst_44 [0] : vector<1x8x128xf32> to vector<8x128xf32>
    %c0_45 = arith.constant 0 : index
    %c0_46 = arith.constant 0 : index
    %c0_47 = arith.constant 0 : index
    %102 = vector.load %arg4[%c0_45, %c0_46, %c0_47] : memref<1x8x128xf32, #tpu.memory_space<vmem>>, vector<1x8x128xf32>
    %103 = vector.shape_cast %102 : vector<1x8x128xf32> to vector<8x128xf32>
    %104 = vector.shape_cast %101 : vector<8x128xf32> to vector<1x8x128xf32>
    tpu.vector_store %arg4[%c0_45, %c0_46, %c0_47], %104 {strides = array<i32>} : memref<1x8x128xf32, #tpu.memory_space<vmem>>, vector<1x8x128xf32>,
    return
  }
  func.func @transform_0(%arg0: i32) -> (i32, i32, i32) {
    %c0_i32 = arith.constant 0 : i32
    %c0_i32_0 = arith.constant 0 : i32
    %c0_i32_1 = arith.constant 0 : i32
    return %c0_i32, %arg0, %c0_i32_0 : i32, i32, i32
  }
  func.func @transform_1(%arg0: i32) -> (i32, i32) {
    %c0_i32 = arith.constant 0 : i32
    %c0_i32_0 = arith.constant 0 : i32
    return %arg0, %c0_i32 : i32, i32
  }
  func.func @transform_2(%arg0: i32) -> (i32, i32) {
    %c0_i32 = arith.constant 0 : i32
    %c0_i32_0 = arith.constant 0 : i32
    %c0_i32_1 = arith.constant 0 : i32
    return %c0_i32, %c0_i32_0 : i32, i32
  }
  func.func @transform_3(%arg0: i32) -> (i32, i32, i32) {
    %c0_i32 = arith.constant 0 : i32
    %c0_i32_0 = arith.constant 0 : i32
    %c0_i32_1 = arith.constant 0 : i32
    return %arg0, %c0_i32, %c0_i32_0 : i32, i32, i32
  }
}

</mosaic_0001>

<bundles_post_ra>
// kernel: tpu_custom_call.1
= control target key start
LH: loop header
LB: loop body
LE: loop exit
PB: predicated region body
PF: predicated region fallthrough
CT: control target
= control target key end

     0   :  { %8 = vsyncpa [#allocation3], 0  ;;  %s356_s0 = inlined_call_operand.hbm [shape: f32[2,8,128], index: 0, kind: input, shape index: {}]   ;;  %s357_s1 = inlined_call_operand.hbm [shape: f32[8,128], index: 1, kind: input, shape index: {}]   ;;  %s358_s2 = inlined_call_operand.hbm [shape: f32[3,7], index: 2, kind: input, shape index: {}]   ;;  %s359_s3 = inlined_call_operand.hbm [shape: f32[1,8,128], index: 3, kind: output, shape index: {}]  }
   0x1   :  { %9 = vsyncpa [#allocation7], 0 }
   0x2   :  { %10 = vsyncpa [#allocation5], 0 }
   0x3   :  { %11 = vsyncpa [#allocation4], 0  ;;  %s16_s14 = sshll.u32 %s356_s0, 4  ;;  %s303_s15 = smov [#allocation2]   ;;  %s17_s14 = int_to_ptr.hbm [resolvable:$true] %s16_s14 }
   0x4   :  { %s18_s16 = sshll.u32 %s303_s15, 4  ;;  %s30_s19 = sshll.u32 %s357_s1, 4  ;;  %s19_s16 = int_to_ptr.vmem [resolvable:$true] %s18_s16  ;;  %s31_s19 = int_to_ptr.hbm [resolvable:$true] %s30_s19 }
   0x5   :  { %s304_s20 = smov 128   ;;  %s305_s21 = smov 8  }
   0x6   :  { %24 = dma.hbm_to_vmem [thread:$0]  %s17_s14, 256, %s19_s16, [#allocation3], %s304_s20, %s304_s20, %s305_s21  }
   0x7   :  { %s306_s22 = smov [#allocation6]   ;;  %s41_s26 = sshll.u32 %s358_s2, 4  ;;  %s42_s26 = int_to_ptr.hbm [resolvable:$true] %s41_s26 }
   0x8   :  { %s32_s23 = sshll.u32 %s306_s22, 4  ;;  %s307_s0 = smov [#allocation8]   ;;  %s33_s23 = int_to_ptr.vmem [resolvable:$true] %s32_s23 }
   0x9   :  { %35 = dma.hbm_to_vmem [thread:$0]  %s31_s19, 128, %s33_s23, [#allocation7]  }
   0xa   :  { %44 = dma.hbm_to_smem %s42_s26, 64, %s307_s0, [#allocation5]  }
   0xb   :  { %295 = dma.done.wait [#allocation3], 256  }
   0xc   :  { %296 = vsyncadd [#allocation3], 4294967040 }
   0xd   :  { %297 = dma.done.wait [#allocation7], 128  }
   0xe   :  { %298 = vsyncadd [#allocation7], 4294967168 }
   0xf   :  { %299 = dma.done.wait [#allocation5], 64  }
  0x10   :  { %300 = vsyncadd [#allocation5], 4294967232 }
  0x11   :  { %57 = sfence }
  0x12   :  { %s338_s1 = sld [smem:[#allocation8]]  ;;  %v58_v0 = vld [vmem:[#allocation2] sm:$0xff]  ;;  %v60_v1 = vld [vmem:[#allocation2 + $0x8] sm:$0xff]  ;;  %s308_s18 = smov [#allocation9]  }
  0x13   :  { %s183_s27 = sld [smem:[#allocation8 + $0x80]]  ;;  %s164_s19 = sshll.u32 %s308_s18, 4  ;;  %s165_s19 = int_to_ptr.vmem [resolvable:$true] %s164_s19 }
  0x14   :  { %s184_s28 = sld [smem:[#allocation8 + $0x81]]  ;;  %s166_s22 = sshll.u32 %s359_s3, 4  ;;  %s167_s22 = int_to_ptr.hbm [resolvable:$true] %s166_s22 }
  0x15   :  { %s185_s29 = sld [smem:[#allocation8 + $0x82]] }
  0x16   :  { %s186_s30 = sld [smem:[#allocation8 + $0x83]] }
  0x17   :  { %s187_s2 = sld [smem:[#allocation8 + $0x84]] }
  0x18   :  { %s340_s4 = sld [smem:[#allocation8 + $0x1]]  ;;  %v62_v21 = vstv %s338_s1 }
  0x19   :  { %v86_v2 = vstv %s183_s27  ;;  %s189_s5 = sld [smem:[#allocation8 + $0x100]]  ;;  %v63_v30 = vsub.f32 %v58_v0, %v62_v21 }
  0x1a   :  { %v87_v3 = vsub.f32 %v58_v0, %v86_v2  ;;  %v89_v4 = vstv %s184_s28  ;;  %s190_s6 = sld [smem:[#allocation8 + $0x101]] }
  0x1b   :  { %v90_v5 = vsub.f32 %v60_v1, %v89_v4  ;;  %v93_v6 = vstv %s185_s29  ;;  %s191_s7 = sld [smem:[#allocation8 + $0x102]]  ;;  %v68_v37 = vmul.f32 %v63_v30, %v63_v30 }
  0x1c   :  { %v92_v7 = vmul.f32 %v87_v3, %v87_v3  ;;  %v97_v8 = vstv %s186_s30  ;;  %s192_s8 = sld [smem:[#allocation8 + $0x103]] }
  0x1d   :  { %v96_v9 = vmul.f32 %v90_v5, %v87_v3  ;;  %v101_v10 = vmul.f32 %v90_v5, %v90_v5  ;;  %v102_v11 = vstv %s187_s2  ;;  %s193_s9 = sld [smem:[#allocation8 + $0x104]] }
  0x1e   :  { %v94_v12 = vmul.f32 %v93_v6, %v92_v7  ;;  %s342_s10 = sld [smem:[#allocation8 + $0x2]]  ;;  %v65_v22 = vstv %s340_s4 }
  0x1f   :  { %v98_v13 = vmul.f32 %v97_v8, %v96_v9  ;;  %v103_v14 = vmul.f32 %v102_v11, %v101_v10  ;;  %v110_v15 = vstv %s189_s5  ;;  %s344_s11 = sld [smem:[#allocation8 + $0x85]]  ;;  %v66_v31 = vsub.f32 %v60_v1, %v65_v22  ;;  %v155_v10 = vld [vmem:[#allocation6] sm:$0xff] }
  0x20   :  { %v111_v16 = vsub.f32 %v58_v0, %v110_v15  ;;  %v113_v17 = vstv %s190_s6  ;;  %s346_s12 = sld [smem:[#allocation8 + $0x3]] }
  0x21   :  { %v99_v18 = vadd.f32 %v98_v13, %v94_v12  ;;  %v114_v19 = vsub.f32 %v60_v1, %v113_v17  ;;  %v117_v20 = vstv %s191_s7  ;;  %s194_s13 = sld [smem:[#allocation8 + $0x105]]  ;;  %v72_v38 = vmul.f32 %v66_v31, %v63_v30 }
  0x22   :  { %v116_v23 = vmul.f32 %v111_v16, %v111_v16  ;;  %v121_v24 = vstv %s192_s8  ;;  %s181_s14 = sld [smem:[#allocation8 + $0x4]]  ;;  %v77_v47 = vmul.f32 %v66_v31, %v66_v31 }
  0x23   :  { %v104_v25 = vadd.f32 %v103_v14, %v99_v18  ;;  %v120_v26 = vmul.f32 %v114_v19, %v111_v16  ;;  %v125_v27 = vmul.f32 %v114_v19, %v114_v19  ;;  %v126_v28 = vstv %s193_s9  ;;  %s182_s15 = sld [smem:[#allocation8 + $0x5]] }
  0x24   :  { %v118_v29 = vmul.f32 %v117_v20, %v116_v23  ;;  %v69_v40 = vstv %s342_s10  ;;  %s195_s16 = sld [smem:[#allocation8 + $0x86]] }
  0x25   :  { %v122_v32 = vmul.f32 %v121_v24, %v120_v26  ;;  %v127_v33 = vmul.f32 %v126_v28, %v125_v27  ;;  %v105_v34 = vmul.f32 -0.5, %v104_v25  ;;  %v107_v36 = vstv %s344_s11  ;;  %s196_s17 = sld [smem:[#allocation8 + $0x106]] }
  0x26   :  { %v73_v41 = vstv %s346_s12  ;;  %v70_v45 = vmul.f32 %v69_v40, %v68_v37 }
  0x27   :  { %v123_v35 = vadd.f32 %v122_v32, %v118_v29  ;;  %v131_v42 = vstv %s194_s13  ;;  %v108_v43 = vadd.f32 %v107_v36, %v105_v34  ;;  %v74_v46 = vmul.f32 %v73_v41, %v72_v38 }
  0x28   :  { %v78_v49 = vstv %s181_s14 }
  0x29   :  { %v128_v39 = vadd.f32 %v127_v33, %v123_v35  ;;  %v75_v51 = vadd.f32 %v74_v46, %v70_v45  ;;  %v79_v52 = vmul.f32 %v78_v49, %v77_v47  ;;  %v83_v60 = vstv %s182_s15 }
  0x2a   :  { %v138_v59 = vstv %s195_s16 }
  0x2b   :  { %v129_v44 = vmul.f32 -0.5, %v128_v39  ;;  %v80_v57 = vadd.f32 %v79_v52, %v75_v51  ;;  %v145_v61 = vstv %s196_s17 }
  0x2d   :  { %v132_v48 = vadd.f32 %v131_v42, %v129_v44  ;;  %v81_v58 = vmul.f32 -0.5, %v80_v57 }
  0x2f   :  { %v133_v50 = vmax.f32 %v108_v43, %v132_v48  ;;  %v84_v1 = vadd.f32 %v83_v60, %v81_v58 }
  0x31   :  { %v135_v53 = vsub.f32 %v108_v43, %v133_v50  ;;  %v142_v54 = vsub.f32 %v132_v48, %v133_v50  ;;  %v151_v4 = vmul.f32 1.442695, %v84_v1 }
  0x33   :  { %v136_v55 = vmul.f32 1.442695, %v135_v53  ;;  %v143_v56 = vmul.f32 1.442695, %v142_v54 }
  0x35   :  { %203 = vpow2.f32 %v136_v55 }
  0x36   :  { %205 = vpow2.f32 %v143_v56 }
  0x3b   :  { %v204_v62 = vpop.eup %203 }
  0x3c   :  { %v206_v63 = vpop.eup %205  ;;  %v139_v0 = vmul.f32 %v204_v62, %v138_v59 }
  0x3d   :  { %v146_v2 = vmul.f32 %v206_v63, %v145_v61 }
  0x3f   :  { %v147_v3 = vadd.f32 %v146_v2, %v139_v0 }
  0x41   :  { %207 = vlog2.f32 %v147_v3 }
  0x42   :  { %209 = vpow2.f32 %v151_v4 }
  0x47   :  { %v208_v5 = vpop.eup %207 }
  0x48   :  { %v149_v6 = vmul.f32 0.6931472, %v208_v5  ;;  %v210_v8 = vpop.eup %209 }
  0x4a   :  { %v150_v7 = vadd.f32 %v149_v6, %v133_v50 }
  0x4c   :  { %v153_v9 = vsub.f32 %v84_v1, %v150_v7 }
  0x4e   :  { %v154_v11 = vmul.f32 %v210_v8, %v153_v9 }
  0x50   :  { %v156_v12 = vmul.f32 %v155_v10, %v154_v11 }
  0x52   :  { %158 = vst [vmem:[#allocation9] sm:$0xff] %v156_v12 }
  0x53   :  { %169 = dma.vmem_to_hbm [thread:$0]  %s165_s19, 128, %s167_s22, [#allocation4]  }
  0x54   :  { %301 = dma.done.wait [#allocation4], 128  }
  0x55   :  { %302 = vsyncadd [#allocation4], 4294967168 }
  0x56   :  { %174 = vsyncpa [#allocation3], 1 }
  0x57   :  { %175 = vsyncpa [#allocation7], 1 }
  0x58   :  { %176 = vsyncpa [#allocation4], 1 }
  0x59   :  { %177 = vsyncpa [#allocation5], 1 }

</bundles_post_ra>
